<compile_context>
chip_gen: v6e
topology: v6e:2x2x1
jax: 0.10.0
libtpu: 0.0.40
codegen_flags: <defaults>
</compile_context>

<pallas_src>
import math

import jax
import jax.numpy as jnp
from jax.experimental import pallas as pl
from jax.experimental.pallas import tpu as pltpu

# ----------------------------- model config ---------------------------------
B = 2           # batch
S = 8           # sequence length
D = 32          # model dim
H = 4           # heads
HD = D // H     # head dim
BS = B * S      # flattened rows
HID = 256 * ((int(2 * 4 * D / 3) + 256 - 1) // 256)   # swiglu hidden dim (=256)
EPS = 1e-5
HALF_D = D // 2
HALF_HD = HD // 2


# ------------------------------ Pallas kernel --------------------------------
def block_kernel(x_ref, win_ref, bqkv_ref, wout_ref, cos_ref, sin_ref,
                 qkm_ref, vm_ref, abias_ref, w12_ref, b12_ref, w3_ref, o_ref):
    f32 = jnp.float32
    bf16 = jnp.bfloat16
    x = x_ref[...].astype(f32)                                  # (BS, D)

    def norm(v):  # LayerNorm without affine (gamma/beta folded into W / bias)
        mu = jnp.mean(v, axis=-1, keepdims=True)
        var = jnp.mean((v - mu) ** 2, axis=-1, keepdims=True)
        return (v - mu) * jax.lax.rsqrt(var + EPS)

    # ---- attention branch ----
    xn = norm(x)
    # bf16 LHS x bf16 weights -> f32 accumulation (native MXU path on v5e/v6e/v7x)
    qkv = jnp.dot(xn.astype(bf16), win_ref[...],
                  preferred_element_type=f32) + bqkv_ref[...]   # (BS, 3D)
    q = qkv[:, 0:D]          # permuted head-dim layout, 1/sqrt(HD) pre-folded
    k = qkv[:, D:2 * D]      # permuted head-dim layout
    v = qkv[:, 2 * D:3 * D]  # original layout

    cos = cos_ref[...]                                          # (BS, D)
    sin = sin_ref[...]                                          # (BS, D), sign-folded

    def rope(t):             # rotate-half == lane roll by D//2 in permuted layout
        return t * cos + pltpu.roll(t, shift=HALF_D, axis=1) * sin

    q = rope(q)
    k = rope(k)

    # Head-masked K / V stacks: row h*BS+t holds k[t]/v[t] with only head h's
    # lanes kept -> whole attention = 2 MXU matmuls instead of 8 per-head ones.
    k_stack = (jnp.concatenate([k] * H, axis=0) * qkm_ref[...]).astype(bf16)  # (H*BS, D)
    v_stack = (jnp.concatenate([v] * H, axis=0) * vm_ref[...]).astype(bf16)   # (H*BS, D)

    NT = (((1,), (1,)), ((), ()))            # contract last dims: q @ k_stack^T
    s = jax.lax.dot_general(q.astype(bf16), k_stack, NT,
                            preferred_element_type=f32)         # (BS, H*BS)
    s = s + abias_ref[...]                   # causal + block-diag(batch), per head

    parts = []
    for h in range(H):                       # static -> unrolled; per-head softmax
        sh = s[:, h * BS:(h + 1) * BS]
        sh = sh - jnp.max(sh, axis=-1, keepdims=True)
        ph = jnp.exp(sh)
        ph = ph * pl.reciprocal(jnp.sum(ph, axis=-1, keepdims=True), approx=True)
        parts.append(ph)
    p = jnp.concatenate(parts, axis=1)       # (BS, H*BS) f32

    attn = jnp.dot(p.astype(bf16), v_stack, preferred_element_type=f32)       # (BS, D)
    h1 = x + jnp.dot(attn.astype(bf16), wout_ref[...], preferred_element_type=f32)

    # ---- feed-forward (SwiGLU) branch ----
    hn = norm(h1)
    h12 = jnp.dot(hn.astype(bf16), w12_ref[...],
                  preferred_element_type=f32) + b12_ref[...]    # (BS, 2*HID)
    x1 = h12[:, :HID]
    x2 = h12[:, HID:]
    gated = x1 * jax.nn.sigmoid(x1) * x2                        # SiLU(x1) * x2, f32
    ffn = jnp.dot(gated.astype(bf16), w3_ref[...], preferred_element_type=f32)

    # NOTE: output last dim is 32 (<128 lanes) -> masked partial stores; total
    # output is 2 KB so a lane-dense relayout is not worth it at this size.
    o_ref[...] = (h1 + ffn).astype(o_ref.dtype)


# ------------------------------ wrapper --------------------------------------
def block_forward(x, kparams):
    x2d = x.reshape(BS, D)
    vspec = pl.BlockSpec(memory_space=pltpu.MemorySpace.VMEM)   # whole array in VMEM
    out2d = pl.pallas_call(
        block_kernel,
        out_shape=jax.ShapeDtypeStruct((BS, D), x.dtype),
        in_specs=[vspec] * 12,
        out_specs=vspec,
    )(x2d, *kparams)
    # TODO(synk): for a stacked n_layers model, fuse layers into one pallas_call
    # (leading layer grid axis 'arbitrary', stacked weights indexed via BlockSpec
    # index_map so layer i+1 weight DMA overlaps layer i compute), and mark a
    # truly independent axis 'parallel' to shard across both v7x TensorCores.
    return out2d.reshape(B, S, D)


def prepare_kernel_params(an_g, an_b, in_proj_w, out_proj_w, cos, sin,
                          fn_g, fn_b, w12_w, w3_w):
    """Host-side prep: transpose weights for x @ W^T, permute q/k head dims so
    rotate-half becomes one lane roll, fold 1/sqrt(HD) into q columns, fold LN
    gamma/beta into weights/bias rows, precompute head-lane & causal masks,
    tile + sign-fold rotary tables, cast weights to bf16."""
    f32, bf16 = jnp.float32, jnp.bfloat16

    # permutation: permuted lane p <- original column orig_col[p]
    p = jnp.arange(D)
    grp = p < HALF_D                                  # first-half group of each head
    h_of_p = jnp.where(grp, p, p - HALF_D) // HALF_HD
    j_of_p = jnp.where(grp, p % HALF_HD, HALF_HD + (p - HALF_D) % HALF_HD)
    orig_col = h_of_p * HD + j_of_p

    win_t = in_proj_w.astype(f32).T                   # (D, 3D)
    wq = win_t[:, 0:D][:, orig_col] * (1.0 / math.sqrt(HD))   # fold attn scale
    wk = win_t[:, D:2 * D][:, orig_col]
    wv = win_t[:, 2 * D:3 * D]                        # v stays in original layout
    win_perm = jnp.concatenate([wq, wk, wv], axis=1)  # (D, 3D) f32

    g_a = an_g.reshape(D).astype(f32)
    b_a = an_b.reshape(1, D).astype(f32)
    win_k = (g_a[:, None] * win_perm).astype(bf16)    # LN gamma folded into rows
    bias_qkv = b_a @ win_perm                         # LN beta folded into bias (1,3D)

    wout_k = out_proj_w.astype(f32).T.astype(bf16)    # (D, D)

    # rotary tables: permuted, sign-folded (rotate-half sign), tiled to (B*S, D)
    cos_p = cos[:, j_of_p]
    sign = jnp.where(grp, -1.0, 1.0).astype(f32)
    sin_p = sin[:, j_of_p] * sign[None, :]
    cos_t = jnp.tile(cos_p, (B, 1))
    sin_t = jnp.tile(sin_p, (B, 1))

    # head-lane masks for the stacked attention matmuls (0/1, f32)
    lane = jnp.arange(D)
    head_qk_lane = (lane % HALF_D) // HALF_HD         # head id of permuted q/k lane
    head_v_lane = lane // HD                          # head id of original v lane
    hrow = jnp.repeat(jnp.arange(H), BS)              # (H*BS,) block head id
    qk_mask = (head_qk_lane[None, :] == hrow[:, None]).astype(f32)   # (H*BS, D)
    v_mask = (head_v_lane[None, :] == hrow[:, None]).astype(f32)     # (H*BS, D)

    # additive causal + block-diagonal(batch) bias, tiled per head -> (BS, H*BS)
    r = jnp.arange(BS)
    valid = ((r[:, None] // S) == (r[None, :] // S)) & (r[None, :] <= r[:, None])
    base = jnp.where(valid, 0.0, -1e30).astype(f32)
    attn_bias = jnp.tile(base, (1, H))

    # FFN weights with ffn_norm gamma/beta folded
    w12_t = w12_w.astype(f32).T                       # (D, 2*HID)
    g_f = fn_g.reshape(D).astype(f32)
    b_f = fn_b.reshape(1, D).astype(f32)
    w12_k = (g_f[:, None] * w12_t).astype(bf16)
    bias_12 = b_f @ w12_t                             # (1, 2*HID)
    w3_k = w3_w.astype(f32).T.astype(bf16)            # (HID, D)

    return (win_k, bias_qkv, wout_k, cos_t, sin_t,
            qk_mask, v_mask, attn_bias, w12_k, bias_12, w3_k)


# ------------------------- pure-JAX reference --------------------------------
def block_reference(x, ref_params):
    """Straightforward Block forward; matmuls use bf16 inputs with f32 accumulation
    to mirror the kernel's MXU dtype policy (apples-to-apples check)."""
    (an_g, an_b, in_proj_w, out_proj_w, cos, sin, fn_g, fn_b, w12_w, w3_w) = ref_params
    f32, bf16 = jnp.float32, jnp.bfloat16

    def mm(a, w_t):   # (..., K) @ (K, N)
        return jax.lax.dot_general(
            a.astype(bf16), w_t.astype(bf16),
            dimension_numbers=(((a.ndim - 1,), (0,)), ((), ())),
            preferred_element_type=f32)

    def ln(v, g, b):
        mu = jnp.mean(v, -1, keepdims=True)
        var = jnp.mean((v - mu) ** 2, -1, keepdims=True)
        return (v - mu) * jax.lax.rsqrt(var + EPS) * g + b

    xn = ln(x, an_g, an_b)
    qkv = mm(xn, in_proj_w.astype(f32).T)
    q, k, v = jnp.split(qkv, 3, axis=-1)
    q = q.reshape(B, S, H, HD)
    k = k.reshape(B, S, H, HD)
    v = v.reshape(B, S, H, HD)

    def rope(t):
        half = HD // 2
        t1, t2 = t[..., :half], t[..., half:]
        rot = jnp.concatenate([-t2, t1], axis=-1)
        return t * cos[None, :, None, :] + rot * sin[None, :, None, :]

    q, k = rope(q), rope(k)
    scores = jnp.einsum("bqhd,bkhd->bhqk", q.astype(bf16), k.astype(bf16),
                        preferred_element_type=f32) / math.sqrt(HD)
    mask = jnp.tril(jnp.ones((S, S), dtype=bool))
    scores = jnp.where(mask[None, None], scores, -1e30)
    p = jax.nn.softmax(scores, axis=-1)
    attn = jnp.einsum("bhqk,bkhd->bqhd", p.astype(bf16), v.astype(bf16),
                      preferred_element_type=f32).reshape(B, S, D)
    h1 = x + mm(attn, out_proj_w.astype(f32).T)

    hn = ln(h1, fn_g, fn_b)
    h12 = mm(hn, w12_w.astype(f32).T)
    x1, x2 = h12[..., :HID], h12[..., HID:]
    ffn = mm(jax.nn.silu(x1) * x2, w3_w.astype(f32).T)
    return h1 + ffn


# ------------------------------ main -----------------------------------------
if __name__ == "__main__":
    key = jax.random.PRNGKey(0)
    k_x, k_in, k_out, k_w12, k_w3 = jax.random.split(key, 5)
    layer_id = 0

    x = jax.random.normal(k_x, (B, S, D), dtype=jnp.float32)

    # Deterministic synthetic init (shapes match nn.Module; normal ~= trunc_normal).
    std_in = 1.0 / math.sqrt(D)
    in_proj_w = jax.random.normal(k_in, (3 * D, D), jnp.float32) * std_in      # (3D, D)
    std_out = std_in / math.sqrt(2 * (layer_id + 1))
    out_proj_w = jax.random.normal(k_out, (D, D), jnp.float32) * std_out       # (D, D)
    w12_w = jax.random.normal(k_w12, (2 * HID, D), jnp.float32) * std_in       # (2*HID, D)
    std_w3 = (1.0 / math.sqrt(HID)) / math.sqrt(2 * (layer_id + 1))
    w3_w = jax.random.normal(k_w3, (D, HID), jnp.float32) * std_w3             # (D, HID)

    an_g = jnp.ones((1, D), jnp.float32)
    an_b = jnp.zeros((1, D), jnp.float32)
    fn_g = jnp.ones((1, D), jnp.float32)
    fn_b = jnp.zeros((1, D), jnp.float32)

    # Rotary tables (GPT-NeoX style rotate_half, base 10000).
    inv_freq = 1.0 / (10000.0 ** (jnp.arange(0, HD, 2, dtype=jnp.float32) / HD))
    t = jnp.arange(S, dtype=jnp.float32)
    freqs = jnp.outer(t, inv_freq)                       # (S, HD/2)
    emb = jnp.concatenate([freqs, freqs], axis=-1)       # (S, HD)
    cos, sin = jnp.cos(emb), jnp.sin(emb)

    ref_params = (an_g, an_b, in_proj_w, out_proj_w, cos, sin,
                  fn_g, fn_b, w12_w, w3_w)
    kern_params = prepare_kernel_params(an_g, an_b, in_proj_w, out_proj_w, cos, sin,
                                        fn_g, fn_b, w12_w, w3_w)

    out = jax.block_until_ready(block_forward(x, kern_params))
    ref = block_reference(x, ref_params)

    assert out.shape == (B, S, D)
    # 1e-2 tolerance: approx (EUP) softmax reciprocal + bf16 weight-fold rounding
    # + f32 accumulation-order noise.
    assert jnp.allclose(out, ref, rtol=1e-2, atol=1e-2), "mismatch vs JAX reference"

    # TODO(synk): kv-cache (past_key_value / use_cache) decode path not implemented;
    # this kernel covers the use_cache=False causal forward of the Block.
    print("KERNEL_OK")
</pallas_src>

<mosaic_0001>
module attributes {stable_mosaic.version = 11 : i64} {
  func.func @block_kernel(%arg0: memref<16x32xf32, #tpu.memory_space<vmem>>, %arg1: memref<32x96xbf16, #tpu.memory_space<vmem>>, %arg2: memref<1x96xf32, #tpu.memory_space<vmem>>, %arg3: memref<32x32xbf16, #tpu.memory_space<vmem>>, %arg4: memref<16x32xf32, #tpu.memory_space<vmem>>, %arg5: memref<16x32xf32, #tpu.memory_space<vmem>>, %arg6: memref<64x32xf32, #tpu.memory_space<vmem>>, %arg7: memref<64x32xf32, #tpu.memory_space<vmem>>, %arg8: memref<16x64xf32, #tpu.memory_space<vmem>>, %arg9: memref<32x512xbf16, #tpu.memory_space<vmem>>, %arg10: memref<1x512xf32, #tpu.memory_space<vmem>>, %arg11: memref<256x32xbf16, #tpu.memory_space<vmem>>, %arg12: memref<16x32xf32, #tpu.memory_space<vmem>>) attributes {dimension_semantics = [], scalar_prefetch = 0 : i64, scratch_operands = 0 : i64, tpu.core_type = #tpu.core_type<tc>} {
    %c0 = arith.constant 0 : index
    %c0_0 = arith.constant 0 : index
    %0 = vector.load %arg0[%c0, %c0_0] : memref<16x32xf32, #tpu.memory_space<vmem>>, vector<16x32xf32>
    %cst = arith.constant dense<0.000000e+00> : vector<16xf32>
    %1 = vector.multi_reduction <add>, %0, %cst [1] : vector<16x32xf32> to vector<16xf32>
    %2 = vector.shape_cast %1 : vector<16xf32> to vector<16x1xf32>
    %cst_1 = arith.constant 3.200000e+01 : f32
    %3 = vector.broadcast %cst_1 : f32 to vector<16x1xf32>
    %4 = arith.divf %2, %3 : vector<16x1xf32>
    %5 = vector.broadcast %4 : vector<16x1xf32> to vector<16x32xf32>
    %6 = arith.subf %0, %5 : vector<16x32xf32>
    %7 = arith.mulf %6, %6 : vector<16x32xf32>
    %cst_2 = arith.constant dense<0.000000e+00> : vector<16xf32>
    %8 = vector.multi_reduction <add>, %7, %cst_2 [1] : vector<16x32xf32> to vector<16xf32>
    %9 = vector.shape_cast %8 : vector<16xf32> to vector<16x1xf32>
    %cst_3 = arith.constant 3.200000e+01 : f32
    %10 = vector.broadcast %cst_3 : f32 to vector<16x1xf32>
    %11 = arith.divf %9, %10 : vector<16x1xf32>
    %12 = vector.broadcast %4 : vector<16x1xf32> to vector<16x32xf32>
    %13 = arith.subf %0, %12 : vector<16x32xf32>
    %cst_4 = arith.constant 9.99999974E-6 : f32
    %14 = vector.broadcast %cst_4 : f32 to vector<16x1xf32>
    %15 = arith.addf %11, %14 : vector<16x1xf32>
    %16 = math.rsqrt %15 : vector<16x1xf32>
    %17 = vector.broadcast %16 : vector<16x1xf32> to vector<16x32xf32>
    %18 = arith.mulf %13, %17 : vector<16x32xf32>
    %19 = arith.truncf %18 : vector<16x32xf32> to vector<16x32xbf16>
    %c0_5 = arith.constant 0 : index
    %c0_6 = arith.constant 0 : index
    %20 = vector.load %arg1[%c0_5, %c0_6] : memref<32x96xbf16, #tpu.memory_space<vmem>>, vector<32x96xbf16>
    %cst_7 = arith.constant dense<0.000000e+00> : vector<16x96xf32>
    %21 = tpu.matmul %19, %20, %cst_7 {dimension_numbers = #tpu.dot_dimension_numbers<[1], [0], [0], [1], [0, 0, 1, 1], [], []>} : vector<16x32xbf16>, vector<32x96xbf16>, vector<16x96xf32> -> vector<16x96xf32>
    %c0_8 = arith.constant 0 : index
    %c0_9 = arith.constant 0 : index
    %22 = vector.load %arg2[%c0_8, %c0_9] : memref<1x96xf32, #tpu.memory_space<vmem>>, vector<1x96xf32>
    %23 = vector.broadcast %22 : vector<1x96xf32> to vector<16x96xf32>
    %24 = arith.addf %21, %23 : vector<16x96xf32>
    %25 = vector.extract_strided_slice %24 {offsets = [0, 0], sizes = [16, 32], strides = [1, 1]} : vector<16x96xf32> to vector<16x32xf32>
    %26 = vector.extract_strided_slice %24 {offsets = [0, 32], sizes = [16, 32], strides = [1, 1]} : vector<16x96xf32> to vector<16x32xf32>
    %27 = vector.extract_strided_slice %24 {offsets = [0, 64], sizes = [16, 32], strides = [1, 1]} : vector<16x96xf32> to vector<16x32xf32>
    %c0_10 = arith.constant 0 : index
    %c0_11 = arith.constant 0 : index
    %28 = vector.load %arg4[%c0_10, %c0_11] : memref<16x32xf32, #tpu.memory_space<vmem>>, vector<16x32xf32>
    %c0_12 = arith.constant 0 : index
    %c0_13 = arith.constant 0 : index
    %29 = vector.load %arg5[%c0_12, %c0_13] : memref<16x32xf32, #tpu.memory_space<vmem>>, vector<16x32xf32>
    %30 = arith.mulf %25, %28 : vector<16x32xf32>
    %c16_i32 = arith.constant 16 : i32
    %31 = tpu.dynamic_rotate %25 by %c16_i32 dim 1 : vector<16x32xf32>, i32 -> vector<16x32xf32>
    %32 = arith.mulf %31, %29 : vector<16x32xf32>
    %33 = arith.addf %30, %32 : vector<16x32xf32>
    %34 = arith.mulf %26, %28 : vector<16x32xf32>
    %c16_i32_14 = arith.constant 16 : i32
    %35 = tpu.dynamic_rotate %26 by %c16_i32_14 dim 1 : vector<16x32xf32>, i32 -> vector<16x32xf32>
    %36 = arith.mulf %35, %29 : vector<16x32xf32>
    %37 = arith.addf %34, %36 : vector<16x32xf32>
    %38 = tpu.concatenate %37, %37, %37, %37 in 0 : vector<16x32xf32>, vector<16x32xf32>, vector<16x32xf32>, vector<16x32xf32> -> vector<64x32xf32>
    %c0_15 = arith.constant 0 : index
    %c0_16 = arith.constant 0 : index
    %39 = vector.load %arg6[%c0_15, %c0_16] : memref<64x32xf32, #tpu.memory_space<vmem>>, vector<64x32xf32>
    %40 = arith.mulf %38, %39 : vector<64x32xf32>
    %41 = arith.truncf %40 : vector<64x32xf32> to vector<64x32xbf16>
    %42 = tpu.concatenate %27, %27, %27, %27 in 0 : vector<16x32xf32>, vector<16x32xf32>, vector<16x32xf32>, vector<16x32xf32> -> vector<64x32xf32>
    %c0_17 = arith.constant 0 : index
    %c0_18 = arith.constant 0 : index
    %43 = vector.load %arg7[%c0_17, %c0_18] : memref<64x32xf32, #tpu.memory_space<vmem>>, vector<64x32xf32>
    %44 = arith.mulf %42, %43 : vector<64x32xf32>
    %45 = arith.truncf %44 : vector<64x32xf32> to vector<64x32xbf16>
    %46 = arith.truncf %33 : vector<16x32xf32> to vector<16x32xbf16>
    %cst_19 = arith.constant dense<0.000000e+00> : vector<16x64xf32>
    %47 = tpu.matmul %46, %41, %cst_19 {dimension_numbers = #tpu.dot_dimension_numbers<[1], [1], [0], [0], [0, 0, 1, 0], [], []>} : vector<16x32xbf16>, vector<64x32xbf16>, vector<16x64xf32> -> vector<16x64xf32>
    %c0_20 = arith.constant 0 : index
    %c0_21 = arith.constant 0 : index
    %48 = vector.load %arg8[%c0_20, %c0_21] : memref<16x64xf32, #tpu.memory_space<vmem>>, vector<16x64xf32>
    %49 = arith.addf %47, %48 : vector<16x64xf32>
    %50 = vector.extract_strided_slice %49 {offsets = [0, 0], sizes = [16, 16], strides = [1, 1]} : vector<16x64xf32> to vector<16x16xf32>
    %cst_22 = arith.constant dense<0xFF800000> : vector<16xf32>
    %51 = vector.multi_reduction <maximumf>, %50, %cst_22 [1] : vector<16x16xf32> to vector<16xf32>
    %52 = vector.shape_cast %51 : vector<16xf32> to vector<16x1xf32>
    %53 = vector.broadcast %52 : vector<16x1xf32> to vector<16x16xf32>
    %54 = arith.subf %50, %53 : vector<16x16xf32>
    %55 = math.exp %54 : vector<16x16xf32>
    %cst_23 = arith.constant dense<0.000000e+00> : vector<16xf32>
    %56 = vector.multi_reduction <add>, %55, %cst_23 [1] : vector<16x16xf32> to vector<16xf32>
    %57 = vector.shape_cast %56 : vector<16xf32> to vector<16x1xf32>
    %58 = tpu.reciprocal %57 {approx = true} : vector<16x1xf32> -> vector<16x1xf32>
    %59 = vector.broadcast %58 : vector<16x1xf32> to vector<16x16xf32>
    %60 = arith.mulf %55, %59 : vector<16x16xf32>
    %61 = vector.extract_strided_slice %49 {offsets = [0, 16], sizes = [16, 16], strides = [1, 1]} : vector<16x64xf32> to vector<16x16xf32>
    %cst_24 = arith.constant dense<0xFF800000> : vector<16xf32>
    %62 = vector.multi_reduction <maximumf>, %61, %cst_24 [1] : vector<16x16xf32> to vector<16xf32>
    %63 = vector.shape_cast %62 : vector<16xf32> to vector<16x1xf32>
    %64 = vector.broadcast %63 : vector<16x1xf32> to vector<16x16xf32>
    %65 = arith.subf %61, %64 : vector<16x16xf32>
    %66 = math.exp %65 : vector<16x16xf32>
    %cst_25 = arith.constant dense<0.000000e+00> : vector<16xf32>
    %67 = vector.multi_reduction <add>, %66, %cst_25 [1] : vector<16x16xf32> to vector<16xf32>
    %68 = vector.shape_cast %67 : vector<16xf32> to vector<16x1xf32>
    %69 = tpu.reciprocal %68 {approx = true} : vector<16x1xf32> -> vector<16x1xf32>
    %70 = vector.broadcast %69 : vector<16x1xf32> to vector<16x16xf32>
    %71 = arith.mulf %66, %70 : vector<16x16xf32>
    %72 = vector.extract_strided_slice %49 {offsets = [0, 32], sizes = [16, 16], strides = [1, 1]} : vector<16x64xf32> to vector<16x16xf32>
    %cst_26 = arith.constant dense<0xFF800000> : vector<16xf32>
    %73 = vector.multi_reduction <maximumf>, %72, %cst_26 [1] : vector<16x16xf32> to vector<16xf32>
    %74 = vector.shape_cast %73 : vector<16xf32> to vector<16x1xf32>
    %75 = vector.broadcast %74 : vector<16x1xf32> to vector<16x16xf32>
    %76 = arith.subf %72, %75 : vector<16x16xf32>
    %77 = math.exp %76 : vector<16x16xf32>
    %cst_27 = arith.constant dense<0.000000e+00> : vector<16xf32>
    %78 = vector.multi_reduction <add>, %77, %cst_27 [1] : vector<16x16xf32> to vector<16xf32>
    %79 = vector.shape_cast %78 : vector<16xf32> to vector<16x1xf32>
    %80 = tpu.reciprocal %79 {approx = true} : vector<16x1xf32> -> vector<16x1xf32>
    %81 = vector.broadcast %80 : vector<16x1xf32> to vector<16x16xf32>
    %82 = arith.mulf %77, %81 : vector<16x16xf32>
    %83 = vector.extract_strided_slice %49 {offsets = [0, 48], sizes = [16, 16], strides = [1, 1]} : vector<16x64xf32> to vector<16x16xf32>
    %cst_28 = arith.constant dense<0xFF800000> : vector<16xf32>
    %84 = vector.multi_reduction <maximumf>, %83, %cst_28 [1] : vector<16x16xf32> to vector<16xf32>
    %85 = vector.shape_cast %84 : vector<16xf32> to vector<16x1xf32>
    %86 = vector.broadcast %85 : vector<16x1xf32> to vector<16x16xf32>
    %87 = arith.subf %83, %86 : vector<16x16xf32>
    %88 = math.exp %87 : vector<16x16xf32>
    %cst_29 = arith.constant dense<0.000000e+00> : vector<16xf32>
    %89 = vector.multi_reduction <add>, %88, %cst_29 [1] : vector<16x16xf32> to vector<16xf32>
    %90 = vector.shape_cast %89 : vector<16xf32> to vector<16x1xf32>
    %91 = tpu.reciprocal %90 {approx = true} : vector<16x1xf32> -> vector<16x1xf32>
    %92 = vector.broadcast %91 : vector<16x1xf32> to vector<16x16xf32>
    %93 = arith.mulf %88, %92 : vector<16x16xf32>
    %94 = tpu.concatenate %60, %71, %82, %93 in 1 : vector<16x16xf32>, vector<16x16xf32>, vector<16x16xf32>, vector<16x16xf32> -> vector<16x64xf32>
    %95 = arith.truncf %94 : vector<16x64xf32> to vector<16x64xbf16>
    %cst_30 = arith.constant dense<0.000000e+00> : vector<16x32xf32>
    %96 = tpu.matmul %95, %45, %cst_30 {dimension_numbers = #tpu.dot_dimension_numbers<[1], [0], [0], [1], [0, 0, 1, 1], [], []>} : vector<16x64xbf16>, vector<64x32xbf16>, vector<16x32xf32> -> vector<16x32xf32>
    %97 = arith.truncf %96 : vector<16x32xf32> to vector<16x32xbf16>
    %c0_31 = arith.constant 0 : index
    %c0_32 = arith.constant 0 : index
    %98 = vector.load %arg3[%c0_31, %c0_32] : memref<32x32xbf16, #tpu.memory_space<vmem>>, vector<32x32xbf16>
    %cst_33 = arith.constant dense<0.000000e+00> : vector<16x32xf32>
    %99 = tpu.matmul %97, %98, %cst_33 {dimension_numbers = #tpu.dot_dimension_numbers<[1], [0], [0], [1], [0, 0, 1, 1], [], []>} : vector<16x32xbf16>, vector<32x32xbf16>, vector<16x32xf32> -> vector<16x32xf32>
    %100 = arith.addf %0, %99 : vector<16x32xf32>
    %cst_34 = arith.constant dense<0.000000e+00> : vector<16xf32>
    %101 = vector.multi_reduction <add>, %100, %cst_34 [1] : vector<16x32xf32> to vector<16xf32>
    %102 = vector.shape_cast %101 : vector<16xf32> to vector<16x1xf32>
    %cst_35 = arith.constant 3.200000e+01 : f32
    %103 = vector.broadcast %cst_35 : f32 to vector<16x1xf32>
    %104 = arith.divf %102, %103 : vector<16x1xf32>
    %105 = vector.broadcast %104 : vector<16x1xf32> to vector<16x32xf32>
    %106 = arith.subf %100, %105 : vector<16x32xf32>
    %107 = arith.mulf %106, %106 : vector<16x32xf32>
    %cst_36 = arith.constant dense<0.000000e+00> : vector<16xf32>
    %108 = vector.multi_reduction <add>, %107, %cst_36 [1] : vector<16x32xf32> to vector<16xf32>
    %109 = vector.shape_cast %108 : vector<16xf32> to vector<16x1xf32>
    %cst_37 = arith.constant 3.200000e+01 : f32
    %110 = vector.broadcast %cst_37 : f32 to vector<16x1xf32>
    %111 = arith.divf %109, %110 : vector<16x1xf32>
    %112 = vector.broadcast %104 : vector<16x1xf32> to vector<16x32xf32>
    %113 = arith.subf %100, %112 : vector<16x32xf32>
    %cst_38 = arith.constant 9.99999974E-6 : f32
    %114 = vector.broadcast %cst_38 : f32 to vector<16x1xf32>
    %115 = arith.addf %111, %114 : vector<16x1xf32>
    %116 = math.rsqrt %115 : vector<16x1xf32>
    %117 = vector.broadcast %116 : vector<16x1xf32> to vector<16x32xf32>
    %118 = arith.mulf %113, %117 : vector<16x32xf32>
    %119 = arith.truncf %118 : vector<16x32xf32> to vector<16x32xbf16>
    %c0_39 = arith.constant 0 : index
    %c0_40 = arith.constant 0 : index
    %120 = vector.load %arg9[%c0_39, %c0_40] : memref<32x512xbf16, #tpu.memory_space<vmem>>, vector<32x512xbf16>
    %cst_41 = arith.constant dense<0.000000e+00> : vector<16x512xf32>
    %121 = tpu.matmul %119, %120, %cst_41 {dimension_numbers = #tpu.dot_dimension_numbers<[1], [0], [0], [1], [0, 0, 1, 1], [], []>} : vector<16x32xbf16>, vector<32x512xbf16>, vector<16x512xf32> -> vector<16x512xf32>
    %c0_42 = arith.constant 0 : index
    %c0_43 = arith.constant 0 : index
    %122 = vector.load %arg10[%c0_42, %c0_43] : memref<1x512xf32, #tpu.memory_space<vmem>>, vector<1x512xf32>
    %123 = vector.broadcast %122 : vector<1x512xf32> to vector<16x512xf32>
    %124 = arith.addf %121, %123 : vector<16x512xf32>
    %125 = vector.extract_strided_slice %124 {offsets = [0, 0], sizes = [16, 256], strides = [1, 1]} : vector<16x512xf32> to vector<16x256xf32>
    %126 = vector.extract_strided_slice %124 {offsets = [0, 256], sizes = [16, 256], strides = [1, 1]} : vector<16x512xf32> to vector<16x256xf32>
    %127 = arith.negf %125 : vector<16x256xf32>
    %128 = math.exp %127 : vector<16x256xf32>
    %cst_44 = arith.constant 1.000000e+00 : f32
    %129 = vector.broadcast %cst_44 : f32 to vector<16x256xf32>
    %130 = arith.addf %129, %128 : vector<16x256xf32>
    %131 = arith.divf %129, %130 : vector<16x256xf32>
    %132 = arith.mulf %125, %131 : vector<16x256xf32>
    %133 = arith.mulf %132, %126 : vector<16x256xf32>
    %134 = arith.truncf %133 : vector<16x256xf32> to vector<16x256xbf16>
    %c0_45 = arith.constant 0 : index
    %c0_46 = arith.constant 0 : index
    %135 = vector.load %arg11[%c0_45, %c0_46] : memref<256x32xbf16, #tpu.memory_space<vmem>>, vector<256x32xbf16>
    %cst_47 = arith.constant dense<0.000000e+00> : vector<16x32xf32>
    %136 = tpu.matmul %134, %135, %cst_47 {dimension_numbers = #tpu.dot_dimension_numbers<[1], [0], [0], [1], [0, 0, 1, 1], [], []>} : vector<16x256xbf16>, vector<256x32xbf16>, vector<16x32xf32> -> vector<16x32xf32>
    %137 = arith.addf %100, %136 : vector<16x32xf32>
    %c0_48 = arith.constant 0 : index
    %c0_49 = arith.constant 0 : index
    %138 = vector.load %arg12[%c0_48, %c0_49] : memref<16x32xf32, #tpu.memory_space<vmem>>, vector<16x32xf32>
    tpu.vector_store %arg12[%c0_48, %c0_49], %137 {strides = array<i32>} : memref<16x32xf32, #tpu.memory_space<vmem>>, vector<16x32xf32>,
    return
  }
}

</mosaic_0001>

<bundles_post_ra>
// kernel: tpu_custom_call.1
= control target key start
LH: loop header
LB: loop body
LE: loop exit
PB: predicated region body
PF: predicated region fallthrough
CT: control target
= control target key end

     0   :  { %vm45_vm0 = vcmask 261120   ;;  %s1746_s0 = inlined_call_operand.vmem [shape: f32[16,32], index: 0, kind: input, shape index: {}]   ;;  %s1747_s1 = inlined_call_operand.vmem [shape: bf16[32,96], index: 1, kind: input, shape index: {}]   ;;  %s1748_s2 = inlined_call_operand.vmem [shape: f32[1,96], index: 2, kind: input, shape index: {}]   ;;  %s1749_s3 = inlined_call_operand.vmem [shape: bf16[32,32], index: 3, kind: input, shape index: {}]   ;;  %s1750_s4 = inlined_call_operand.vmem [shape: f32[16,32], index: 4, kind: input, shape index: {}]   ;;  %s1751_s5 = inlined_call_operand.vmem [shape: f32[16,32], index: 5, kind: input, shape index: {}]   ;;  %s1752_s6 = inlined_call_operand.vmem [shape: f32[64,32], index: 6, kind: input, shape index: {}]   ;;  %s1753_s7 = inlined_call_operand.vmem [shape: f32[64,32], index: 7, kind: input, shape index: {}]   ;;  %s1754_s8 = inlined_call_operand.vmem [shape: f32[16,64], index: 8, kind: input, shape index: {}]   ;;  %s1755_s9 = inlined_call_operand.vmem [shape: bf16[32,512], index: 9, kind: input, shape index: {}]   ;;  %s1756_s10 = inlined_call_operand.vmem [shape: f32[1,512], index: 10, kind: input, shape index: {}]   ;;  %s1757_s11 = inlined_call_operand.vmem [shape: bf16[256,32], index: 11, kind: input, shape index: {}]   ;;  %s1758_s12 = inlined_call_operand.hbm [shape: f32[16,32], index: 12, kind: output, shape index: {}]  }
   0x1   :  { %v1373_v0 = vld [vmem:[%s1746_s0] sm:$0xff]  ;;  %v1378_v1 = vld [vmem:[%s1746_s0 + $0x8] sm:$0xff] }
   0x2   :  { %v46_v2 = vsel %vm45_vm0, %v1373_v0, 0.0  ;;  %v49_v3 = vsel %vm45_vm0, %v1378_v1, 0.0 }
   0x3   :  { %47 = vadd.xlane.f32.xlu0 %v46_v2 }
   0x7   :  { %50 = vadd.xlane.f32.xlu0 %v49_v3 }
   0x8   :  { %17 = vsyncpa [#allocation3], 0  ;;  %v1183_v14 = vld [vmem:[%s1747_s1 + $0x8] sm:$0xff]   ;;  %v1293_v15 = vmov 0.0   ;;  %vm1294_vm1 = vmmov 0   ;;  %v1184_v16 = vld [vmem:[%s1747_s1] sm:$0xff]  }
   0x9   :  { %1131 = vmatprep.subr.bf16.mxu0 %v1293_v15  ;;  %1135 = vmatprep.mubr.msk.bf16.mxu0 %vm1294_vm1, %v1293_v15  ;;  %v1054_v28 = vld [vmem:[%s1748_s2] ss:$0 sm:$0xff]  ;;  %s1295_s29 = smov 96   ;;  %s1296_s30 = smov 32   ;;  %vm147_vm2 = vcmask 1047808   ;;  %v144_v42 = vld [vmem:[%s1751_s5 + $0x8] sm:$0xff] }
   0xa   :  { %1132 = vmatpush3.bf16.msra.mxu0 %v1183_v14  ;;  %1139 = vmatprep.subr.bf16.mxu1 %v1293_v15  ;;  %v143_v39 = vld [vmem:[%s1751_s5] sm:$0xff]  ;;  %s1297_s14 = smov 16   ;;  %v1442_v44 = vld [vmem:[%s1750_s4 + $0x8] sm:$0xff]  ;;  %v228_v52 = vld [vmem:[%s1752_s6 + $0x30] sm:$0xff]  ;;  %vm420_vm3 = vcmask 261248   ;;  %vm451_vm4 = vcmask 392448  }
   0xb   :  { %1133 = vmatprep.subr.bf16.mxu0 %v1293_v15  ;;  %1147 = vmatprep.mubr.msk.bf16.mxu1 %vm1294_vm1, %v1293_v15  ;;  %v1433_v43 = vld [vmem:[%s1750_s4] sm:$0xff]  ;;  %v229_v55 = vld [vmem:[%s1752_s6 + $0x38] sm:$0xff]  ;;  %v224_v56 = vld [vmem:[%s1752_s6 + $0x10] sm:$0xff]  ;;  %vm482_vm5 = vcmask 523648   ;;  %vm397_vm6 = vcmask 130048   ;;  %s1299_s20 = smov 64  }
   0xc   :  { %v226_v54 = vld [vmem:[%s1752_s6 + $0x20] sm:$0xff]  ;;  %v227_v57 = vld [vmem:[%s1752_s6 + $0x28] sm:$0xff]  ;;  %v225_v59 = vld [vmem:[%s1752_s6 + $0x18] sm:$0xff]  ;;  %s1300_s1 = smov 80   ;;  %vm517_vm7 = vcmask 392192   ;;  %vm537_vm8 = vcmask 523264  }
   0xd   :  { %v222_v58 = vld [vmem:[%s1752_s6] sm:$0xff]  ;;  %v223_v61 = vld [vmem:[%s1752_s6 + $0x8] sm:$0xff]  ;;  %s1298_s6 = smov 112  }
   0xe   :  { %1134 = vmatpush3.bf16.msra.mxu0 %v1184_v16 }
   0xf   :  { %1163 = vmatprep.subr.bf16.mxu0 %v1293_v15 }
  0x8c   :  { %v48_v4 = vpop.xlane.xlu0 %47 }
  0x8d   :  { %v53_v5 = vmul.f32 0.03125, %v48_v4 }
  0x8f   :  { %v55_v6 = vsub.f32 %v1373_v0, %v53_v5 }
  0x90   :  { %v51_v7 = vpop.xlane.xlu0 %50 }
  0x91   :  { %v54_v8 = vmul.f32 0.03125, %v51_v7  ;;  %v57_v9 = vmul.f32 %v55_v6, %v55_v6 }
  0x93   :  { %v56_v10 = vsub.f32 %v1378_v1, %v54_v8  ;;  %v59_v11 = vsel %vm45_vm0, %v57_v9, 0.0 }
  0x94   :  { %60 = vadd.xlane.f32.xlu1 %v59_v11 }
  0x95   :  { %v58_v12 = vmul.f32 %v56_v10, %v56_v10 }
  0x97   :  { %v62_v13 = vsel %vm45_vm0, %v58_v12, 0.0 }
  0x98   :  { %63 = vadd.xlane.f32.xlu1 %v62_v13 }
 0x11d   :  { %v61_v17 = vpop.xlane.xlu1 %60 }
 0x11e   :  { %v65_v18 = vmul.f32 0.03125, %v61_v17 }
 0x120   :  { %v67_v19 = vadd.f32 1e-05, %v65_v18 }
 0x121   :  { %v64_v20 = vpop.xlane.xlu1 %63 }
 0x122   :  { %v66_v21 = vmul.f32 0.03125, %v64_v20  ;;  %1215 = vrsqrt.f32 %v67_v19 }
 0x124   :  { %v68_v22 = vadd.f32 1e-05, %v66_v21 }
 0x126   :  { %1217 = vrsqrt.f32 %v68_v22 }
 0x12f   :  { %v1216_v23 = vpop.eup %1215 }
 0x130   :  { %v71_v25 = vmul.f32 %v1216_v23, %v55_v6 }
 0x133   :  { %v1218_v24 = vpop.eup %1217 }
 0x134   :  { %v72_v26 = vmul.f32 %v1218_v24, %v56_v10 }
 0x136   :  { %v73_v27 = vpack.c.bf16 %v72_v26, %v71_v25 }
 0x138   :  { %1136 = vmatmul.mubr.msk.bf16.vlgmr.msra.gmra.mxu0 %vm45_vm0, %v73_v27 }
 0x139   :  { %1167 = vmatprep.mubr.msk.bf16.mxu0 %vm1294_vm1, %v1293_v15 }
 0x1f8   :  { %v134_v29 = vpop.f32.mrf.mxu0 }
 0x1f9   :  { %v1408_v30 = vadd.f32 %v1054_v28, %v134_v29 }
 0x1fa   :  { %v1137_v31 = vpop.f32.mrf.mxu0 }
 0x1fb   :  { %192 = vrot.lane.b32.xlu0 %v1408_v30, %s1295_s29 }
 0x1fc   :  { %v137_v32 = vpop.f32.mrf.mxu0 }
 0x1fd   :  { %v1412_v33 = vadd.f32 %v1054_v28, %v137_v32 }
 0x1fe   :  { %v1138_v34 = vpop.f32.mrf.mxu0 }
 0x1ff   :  { %194 = vrot.lane.b32.xlu1 %v1412_v33, %s1295_s29 }
 0x26d   :  { %v193_v35 = vpop.permute.xlu0 %192 }
 0x26e   :  { %198 = vrot.lane.b32.xlu1 %v193_v35, %s1296_s30 }
 0x271   :  { %v195_v36 = vpop.permute.xlu1 %194 }
 0x272   :  { %201 = vrot.lane.b32.xlu1 %v195_v36, %s1296_s30 }
 0x2e0   :  { %v199_v37 = vpop.permute.xlu1 %198 }
 0x2e1   :  { %v200_v38 = vsel %vm147_vm2, %v199_v37, %v193_v35 }
 0x2e2   :  { %204 = vrot.lane.b32.xlu0 %v200_v38, %s1296_s30 }
 0x2e4   :  { %v202_v40 = vpop.permute.xlu1 %201 }
 0x2e5   :  { %v203_v41 = vsel %vm147_vm2, %v202_v40, %v195_v36 }
 0x2e6   :  { %162 = vrot.lane.b32.xlu0 %v143_v39, %s1297_s14  ;;  %206 = vrot.lane.b32.xlu1 %v203_v41, %s1296_s30 }
 0x2ea   :  { %148 = vrot.lane.b32.xlu0 %v1408_v30, %s1296_s30  ;;  %164 = vrot.lane.b32.xlu1 %v144_v42, %s1297_s14 }
 0x2ee   :  { %182 = vrot.lane.b32.xlu0 %v1433_v43, %s1296_s30  ;;  %151 = vrot.lane.b32.xlu1 %v1412_v33, %s1296_s30 }
 0x2f2   :  { %184 = vrot.lane.b32.xlu1 %v1442_v44, %s1296_s30 }
 0x354   :  { %v205_v45 = vpop.permute.xlu0 %204 }
 0x355   :  { %v208_v46 = vsel %vm147_vm2, %v205_v45, %v193_v35 }
 0x358   :  { %v163_v47 = vpop.permute.xlu0 %162  ;;  %v207_v48 = vpop.permute.xlu1 %206 }
 0x359   :  { %v210_v49 = vmul.f32 %v208_v46, %v163_v47  ;;  %v209_v50 = vsel %vm147_vm2, %v207_v48, %v195_v36 }
 0x35b   :  { %214 = vrot.lane.b32.xlu0 %v210_v49, %s1297_s14 }
 0x35c   :  { %v1448_v51 = vpop.permute.xlu1 %164  ;;  %v149_v60 = vpop.permute.xlu0 %148 }
 0x35d   :  { %v211_v53 = vmul.f32 %v209_v50, %v1448_v51  ;;  %v150_v62 = vsel %vm147_vm2, %v149_v60, %v1408_v30 }
 0x35f   :  { %250 = vrot.lane.b32.xlu0 %v228_v52, %s1296_s30  ;;  %216 = vrot.lane.b32.xlu1 %v211_v53, %s1297_s14  ;;  %v145_v53 = vmul.f32 %v1433_v43, %v1408_v30  ;;  %v328_v43 = vld [vmem:[%s1754_s8 + $0x8] sm:$0xff] }
 0x360   :  { %v152_v63 = vpop.permute.xlu1 %151  ;;  %v183_v3 = vpop.permute.xlu0 %182 }
 0x361   :  { %v153_v2 = vsel %vm147_vm2, %v152_v63, %v1412_v33  ;;  %v188_v8 = vmul.f32 %v183_v3, %v1408_v30 }
 0x363   :  { %246 = vrot.lane.b32.xlu0 %v226_v54, %s1296_s30  ;;  %252 = vrot.lane.b32.xlu1 %v229_v55, %s1296_s30 }
 0x364   :  { %v185_v4 = vpop.permute.xlu1 %184 }
 0x365   :  { %v189_v9 = vmul.f32 %v185_v4, %v1412_v33 }
 0x367   :  { %242 = vrot.lane.b32.xlu0 %v224_v56, %s1296_s30  ;;  %248 = vrot.lane.b32.xlu1 %v227_v57, %s1296_s30  ;;  %v327_v57 = vld [vmem:[%s1754_s8] sm:$0xff] }
 0x36b   :  { %238 = vrot.lane.b32.xlu0 %v222_v58, %s1296_s30  ;;  %244 = vrot.lane.b32.xlu1 %v225_v59, %s1296_s30 }
 0x36f   :  { %154 = vrot.lane.b32.xlu0 %v150_v62, %s1296_s30  ;;  %240 = vrot.lane.b32.xlu1 %v223_v61, %s1296_s30 }
 0x373   :  { %156 = vrot.lane.b32.xlu1 %v153_v2, %s1296_s30 }
 0x3cd   :  { %v215_v5 = vpop.permute.xlu0 %214 }
 0x3ce   :  { %v220_v10 = vadd.f32 %v215_v5, %v188_v8  ;;  %v280_v8 = vld [vmem:[%s1753_s7 + $0x30] sm:$0xff] }
 0x3d1   :  { %v251_v6 = vpop.permute.xlu0 %250  ;;  %v217_v7 = vpop.permute.xlu1 %216 }
 0x3d2   :  { %v221_v11 = vadd.f32 %v217_v7, %v189_v9  ;;  %v268_v14 = vmul.f32 %v251_v6, %v220_v10  ;;  %v281_v7 = vld [vmem:[%s1753_s7 + $0x38] sm:$0xff]  ;;  %v278_v9 = vld [vmem:[%s1753_s7 + $0x20] sm:$0xff] }
 0x3d5   :  { %v247_v12 = vpop.permute.xlu0 %246  ;;  %v253_v13 = vpop.permute.xlu1 %252 }
 0x3d6   :  { %v269_v16 = vmul.f32 %v253_v13, %v221_v11  ;;  %v266_v20 = vmul.f32 %v247_v12, %v220_v10 }
 0x3d8   :  { %v273_v17 = vpack.c.bf16 %v269_v16, %v268_v14 }
 0x3d9   :  { %v243_v18 = vpop.permute.xlu0 %242  ;;  %v249_v19 = vpop.permute.xlu1 %248 }
 0x3da   :  { %v267_v21 = vmul.f32 %v249_v19, %v221_v11  ;;  %339 = vrot.lane.b32.xlu0 %v273_v17, %s1295_s29  ;;  %v264_v25 = vmul.f32 %v243_v18, %v220_v10 }
 0x3dc   :  { %v272_v22 = vpack.c.bf16 %v267_v21, %v266_v20 }
 0x3dd   :  { %v239_v23 = vpop.permute.xlu0 %238  ;;  %v245_v24 = vpop.permute.xlu1 %244 }
 0x3de   :  { %v265_v26 = vmul.f32 %v245_v24, %v221_v11  ;;  %337 = vrot.lane.b32.xlu1 %v272_v22, %s1295_s29  ;;  %v262_v31 = vmul.f32 %v239_v23, %v220_v10 }
 0x3e0   :  { %v271_v27 = vpack.c.bf16 %v265_v26, %v264_v25 }
 0x3e1   :  { %v155_v28 = vpop.permute.xlu0 %154  ;;  %v241_v29 = vpop.permute.xlu1 %240 }
 0x3e2   :  { %v158_v32 = vsel %vm147_vm2, %v155_v28, %v1408_v30  ;;  %v263_v34 = vmul.f32 %v241_v29, %v221_v11  ;;  %335 = vrot.lane.b32.xlu0 %v271_v27, %s1295_s29  ;;  %v279_v11 = vld [vmem:[%s1753_s7 + $0x28] sm:$0xff] }
 0x3e3   :  { %v168_v35 = vmul.f32 %v163_v47, %v158_v32  ;;  %v277_v32 = vld [vmem:[%s1753_s7 + $0x18] sm:$0xff] }
 0x3e4   :  { %v270_v36 = vpack.c.bf16 %v263_v34, %v262_v31  ;;  %v275_v34 = vld [vmem:[%s1753_s7 + $0x8] sm:$0xff] }
 0x3e5   :  { %v157_v37 = vpop.permute.xlu1 %156 }
 0x3e6   :  { %v159_v38 = vsel %vm147_vm2, %v157_v37, %v1412_v33  ;;  %172 = vrot.lane.b32.xlu0 %v168_v35, %s1298_s6  ;;  %333 = vrot.lane.b32.xlu1 %v270_v36, %s1295_s29  ;;  %v276_v36 = vld [vmem:[%s1753_s7 + $0x10] sm:$0xff] }
 0x3e7   :  { %v169_v39 = vmul.f32 %v1448_v51, %v159_v38  ;;  %v146_v51 = vmul.f32 %v1442_v44, %v1412_v33  ;;  %v274_v38 = vld [vmem:[%s1753_s7] sm:$0xff] }
 0x3ea   :  { %174 = vrot.lane.b32.xlu1 %v169_v39, %s1298_s6 }
 0x44c   :  { %v340_v40 = vpop.permute.xlu0 %339 }
 0x44d   :  { %v354_v41 = vsel %vm45_vm0, %v340_v40, 0 }
 0x44e   :  { %1140 = vmatpush3.bf16.xpose.msra.mxu1 %v354_v41 }
 0x44f   :  { %1141 = vmatprep.subr.bf16.mxu1 %v1293_v15 }
 0x450   :  { %v338_v42 = vpop.permute.xlu1 %337 }
 0x451   :  { %v351_v45 = vsel %vm45_vm0, %v338_v42, 0 }
 0x454   :  { %v336_v46 = vpop.permute.xlu0 %335 }
 0x455   :  { %v348_v47 = vsel %vm45_vm0, %v336_v46, 0 }
 0x456   :  { %1142 = vmatpush3.bf16.xpose.msra.mxu1 %v351_v45 }
 0x457   :  { %1143 = vmatprep.subr.bf16.mxu1 %v1293_v15 }
 0x458   :  { %v334_v48 = vpop.permute.xlu1 %333  ;;  %v173_v52 = vpop.permute.xlu0 %172 }
 0x459   :  { %v345_v50 = vsel %vm45_vm0, %v334_v48, 0  ;;  %v178_v55 = vadd.f32 %v173_v52, %v145_v53 }
 0x45c   :  { %v175_v49 = vpop.permute.xlu1 %174 }
 0x45d   :  { %v179_v54 = vadd.f32 %v175_v49, %v146_v51 }
 0x45e   :  { %1144 = vmatpush3.bf16.xpose.msra.mxu1 %v348_v47 }
 0x45f   :  { %1145 = vmatprep.subr.bf16.mxu1 %v1293_v15  ;;  %v326_v56 = vpack.c.bf16 %v179_v54, %v178_v55 }
 0x466   :  { %1146 = vmatpush3.bf16.xpose.msra.mxu1 %v345_v50 }
 0x467   :  { %1151 = vmatprep.subr.bf16.mxu1 %v1293_v15 }
 0x46d   :  { %1148 = vmatmul.mubr.msk.bf16.vlgmr.msra.gmra.mxu1 %vm45_vm0, %v326_v56 }
 0x46e   :  { %1159 = vmatprep.mubr.msk.bf16.mxu1 %vm1294_vm1, %v1293_v15 }
 0x52d   :  { %v390_v44 = vpop.f32.mrf.mxu1 }
 0x52e   :  { %v1520_v58 = vadd.f32 %v390_v44, %v327_v57 }
 0x52f   :  { %v1149_v59 = vpop.f32.mrf.mxu1 }
 0x530   :  { %v421_v60 = vsel %vm420_vm3, %v1520_v58, -inf  ;;  %v452_v2 = vsel %vm451_vm4, %v1520_v58, -inf  ;;  %v483_v5 = vsel %vm482_vm5, %v1520_v58, -inf  ;;  %v398_v6 = vsel %vm397_vm6, %v1520_v58, -inf }
 0x531   :  { %422 = vmax.xlane.f32.xlu0 %v421_v60  ;;  %v393_v61 = vpop.f32.mrf.mxu1 }
 0x532   :  { %v1526_v62 = vadd.f32 %v393_v61, %v328_v43 }
 0x533   :  { %v1150_v63 = vpop.f32.mrf.mxu1 }
 0x534   :  { %v424_v3 = vsel %vm420_vm3, %v1526_v62, -inf  ;;  %v455_v4 = vsel %vm451_vm4, %v1526_v62, -inf  ;;  %v486_v10 = vsel %vm482_vm5, %v1526_v62, -inf  ;;  %v401_v12 = vsel %vm397_vm6, %v1526_v62, -inf }
 0x535   :  { %453 = vmax.xlane.f32.xlu0 %v452_v2  ;;  %425 = vmax.xlane.f32.xlu1 %v424_v3 }
 0x539   :  { %456 = vmax.xlane.f32.xlu0 %v455_v4 }
 0x53d   :  { %484 = vmax.xlane.f32.xlu0 %v483_v5 }
 0x541   :  { %399 = vmax.xlane.f32.xlu0 %v398_v6 }
 0x546   :  { %304 = vrot.lane.b32.xlu1 %v281_v7, %s1299_s20 }
 0x557   :  { %302 = vrot.lane.b32.xlu0 %v280_v8, %s1299_s20 }
 0x55b   :  { %298 = vrot.lane.b32.xlu0 %v278_v9, %s1299_s20 }
 0x56a   :  { %487 = vmax.xlane.f32.xlu1 %v486_v10 }
 0x57b   :  { %300 = vrot.lane.b32.xlu1 %v279_v11, %s1299_s20 }
 0x59f   :  { %402 = vmax.xlane.f32.xlu1 %v401_v12 }
 0x5ba   :  { %v423_v13 = vpop.xlane.xlu0 %422 }
 0x5bb   :  { %v427_v14 = vsub.f32 %v1520_v58, %v423_v13 }
 0x5bd   :  { %v429_v16 = vmul.f32 1.442695, %v427_v14 }
 0x5be   :  { %v454_v17 = vpop.xlane.xlu0 %453  ;;  %v426_v21 = vpop.xlane.xlu1 %425 }
 0x5bf   :  { %1219 = vpow2.f32 %v429_v16  ;;  %v458_v18 = vsub.f32 %v1520_v58, %v454_v17  ;;  %v428_v23 = vsub.f32 %v1526_v62, %v426_v21 }
 0x5c1   :  { %v460_v19 = vmul.f32 1.442695, %v458_v18  ;;  %v431_v26 = vmul.f32 1.442695, %v428_v23 }
 0x5c2   :  { %v457_v20 = vpop.xlane.xlu0 %456  ;;  %v305_v45 = vpop.permute.xlu1 %304 }
 0x5c3   :  { %1221 = vpow2.f32 %v460_v19  ;;  %v459_v27 = vsub.f32 %v1526_v62, %v457_v20  ;;  %v321_v14 = vmul.f32 %v305_v45, %v1412_v33 }
 0x5c5   :  { %v462_v29 = vmul.f32 1.442695, %v459_v27 }
 0x5c6   :  { %v485_v22 = vpop.xlane.xlu0 %484 }
 0x5c7   :  { %v489_v24 = vsub.f32 %v1520_v58, %v485_v22 }
 0x5c9   :  { %v491_v25 = vmul.f32 1.442695, %v489_v24 }
 0x5ca   :  { %v400_v40 = vpop.xlane.xlu0 %399 }
 0x5cb   :  { %1223 = vpow2.f32 %v491_v25  ;;  %v404_v41 = vsub.f32 %v1520_v58, %v400_v40  ;;  %v1185_v25 = vld [vmem:[%s1749_s3 + $0x8] sm:$0xff]  }
 0x5cc   :  { %v1558_v28 = vpop.eup %1219  ;;  %1225 = vpow2.f32 %v431_v26  ;;  %1164 = vmatpush3.bf16.msra.mxu0 %v1185_v25  ;;  %v1195_v25 = vld [vmem:[%s1755_s9 + $0x4] ss:$16 sps:$4 sm:$0xff]  }
 0x5cd   :  { %435 = vrot.lane.b32.xlu0 %v1558_v28, %s1298_s6  ;;  %1227 = vpow2.f32 %v462_v29  ;;  %v406_v42 = vmul.f32 1.442695, %v404_v41  ;;  %1165 = vmatprep.subr.bf16.mxu0 %v1293_v15 }
 0x5ce   :  { %v303_v56 = vpop.permute.xlu0 %302 }
 0x5cf   :  { %1229 = vpow2.f32 %v406_v42  ;;  %v320_v13 = vmul.f32 %v303_v56, %v1408_v30 }
 0x5d0   :  { %v1562_v31 = vpop.eup %1221 }
 0x5d1   :  { %466 = vrot.lane.b32.xlu1 %v1562_v31, %s1295_s29  ;;  %v325_v16 = vpack.c.bf16 %v321_v14, %v320_v13 }
 0x5d2   :  { %v299_v44 = vpop.permute.xlu0 %298 }
 0x5d3   :  { %v318_v2 = vmul.f32 %v299_v44, %v1408_v30 }
 0x5d5   :  { %296 = vrot.lane.b32.xlu1 %v277_v32, %s1299_s20 }
 0x5d8   :  { %v1573_v35 = vpop.eup %1223 }
 0x5d9   :  { %497 = vrot.lane.b32.xlu0 %v1573_v35, %s1300_s1  ;;  %292 = vrot.lane.b32.xlu1 %v275_v34, %s1299_s20  ;;  %v1580_v37 = vpop.eup %1225 }
 0x5da   :  { %v1588_v39 = vpop.eup %1227 }
 0x5dc   :  { %v1595_v49 = vpop.eup %1229 }
 0x5dd   :  { %294 = vrot.lane.b32.xlu0 %v276_v36, %s1299_s20  ;;  %437 = vrot.lane.b32.xlu1 %v1580_v37, %s1298_s6  ;;  %v410_v50 = vsel %vm397_vm6, %v1595_v49, 0.0 }
 0x5e1   :  { %290 = vrot.lane.b32.xlu0 %v274_v38, %s1299_s20  ;;  %468 = vrot.lane.b32.xlu1 %v1588_v39, %s1295_s29 }
 0x5f3   :  { %v488_v46 = vpop.xlane.xlu1 %487 }
 0x5f4   :  { %v490_v47 = vsub.f32 %v1526_v62, %v488_v46 }
 0x5f6   :  { %v493_v48 = vmul.f32 1.442695, %v490_v47 }
 0x5f7   :  { %v301_v52 = vpop.permute.xlu1 %300 }
 0x5f8   :  { %1231 = vpow2.f32 %v493_v48 }
 0x600   :  { %411 = vadd.xlane.f32.xlu0 %v410_v50 }
 0x605   :  { %v1599_v51 = vpop.eup %1231 }
 0x606   :  { %499 = vrot.lane.b32.xlu1 %v1599_v51, %s1300_s1 }
 0x628   :  { %v403_v53 = vpop.xlane.xlu1 %402 }
 0x629   :  { %v405_v54 = vsub.f32 %v1526_v62, %v403_v53  ;;  %v319_v62 = vmul.f32 %v301_v52, %v1412_v33 }
 0x62b   :  { %v408_v55 = vmul.f32 1.442695, %v405_v54  ;;  %v324_v3 = vpack.c.bf16 %v319_v62, %v318_v2 }
 0x62d   :  { %1233 = vpow2.f32 %v408_v55 }
 0x63a   :  { %v1603_v57 = vpop.eup %1233 }
 0x63b   :  { %v413_v58 = vsel %vm397_vm6, %v1603_v57, 0.0 }
 0x63c   :  { %414 = vadd.xlane.f32.xlu1 %v413_v58 }
 0x63f   :  { %v436_v59 = vpop.permute.xlu0 %435 }
 0x640   :  { %v441_v43 = vsel %vm397_vm6, %v436_v59, 0.0 }
 0x641   :  { %442 = vadd.xlane.f32.xlu0 %v441_v43 }
 0x643   :  { %v467_v60 = vpop.permute.xlu1 %466 }
 0x644   :  { %v472_v61 = vsel %vm397_vm6, %v467_v60, 0.0 }
 0x645   :  { %473 = vadd.xlane.f32.xlu0 %v472_v61 }
 0x647   :  { %v297_v63 = vpop.permute.xlu1 %296 }
 0x648   :  { %v317_v9 = vmul.f32 %v297_v63, %v1412_v33 }
 0x64b   :  { %v498_v4 = vpop.permute.xlu0 %497  ;;  %v293_v5 = vpop.permute.xlu1 %292 }
 0x64c   :  { %v503_v6 = vsel %vm397_vm6, %v498_v4, 0.0  ;;  %v315_v23 = vmul.f32 %v293_v5, %v1412_v33 }
 0x64d   :  { %529 = vrot.lane.b32.xlu1 %v324_v3, %s1299_s20  ;;  %504 = vadd.xlane.f32.xlu0 %v503_v6 }
 0x64f   :  { %v295_v7 = vpop.permute.xlu0 %294  ;;  %v438_v8 = vpop.permute.xlu1 %437 }
 0x650   :  { %v316_v10 = vmul.f32 %v295_v7, %v1408_v30  ;;  %v444_v11 = vsel %vm397_vm6, %v438_v8, 0.0 }
 0x651   :  { %445 = vadd.xlane.f32.xlu0 %v444_v11 }
 0x652   :  { %v323_v12 = vpack.c.bf16 %v317_v9, %v316_v10 }
 0x653   :  { %v469_v17 = vpop.permute.xlu1 %468  ;;  %v291_v21 = vpop.permute.xlu0 %290 }
 0x654   :  { %527 = vrot.lane.b32.xlu1 %v323_v12, %s1299_s20  ;;  %v475_v18 = vsel %vm397_vm6, %v469_v17, 0.0  ;;  %v314_v22 = vmul.f32 %v291_v21, %v1408_v30  ;;  %v1187_v21 = vld [vmem:[%s1755_s9 + $0x20] ss:$16 sps:$4 sm:$0xff]  }
 0x656   :  { %v322_v24 = vpack.c.bf16 %v315_v23, %v314_v22  ;;  %v1189_v22 = vld [vmem:[%s1755_s9 + $0x24] ss:$16 sps:$4 sm:$0xff]   ;;  %v1190_v23 = vld [vmem:[%s1755_s9 + $0x28] ss:$16 sps:$4 sm:$0xff]  }
 0x667   :  { %531 = vrot.lane.b32.xlu0 %v325_v16, %s1299_s20 }
 0x678   :  { %476 = vadd.xlane.f32.xlu1 %v475_v18  ;;  %v500_v19 = vpop.permute.xlu1 %499 }
 0x679   :  { %v506_v20 = vsel %vm397_vm6, %v500_v19, 0.0 }
 0x67c   :  { %507 = vadd.xlane.f32.xlu1 %v506_v20 }
 0x689   :  { %v412_v26 = vpop.xlane.xlu0 %411 }
 0x68a   :  { %1235 = vrcp.f32 %v412_v26  ;;  %v1198_v26 = vld [vmem:[%s1755_s9 + $0xc] ss:$16 sps:$4 sm:$0xff]  }
 0x68d   :  { %525 = vrot.lane.b32.xlu1 %v322_v24, %s1299_s20  ;;  %v1192_v24 = vld [vmem:[%s1755_s9 + $0x2c] ss:$16 sps:$4 sm:$0xff]  }
 0x697   :  { %v1236_v42 = vpop.eup %1235 }
 0x698   :  { %v418_v44 = vmul.f32 %v1236_v42, %v1595_v49 }
 0x6c5   :  { %v415_v34 = vpop.xlane.xlu1 %414 }
 0x6c6   :  { %1237 = vrcp.f32 %v415_v34 }
 0x6c9   :  { %v530_v30 = vpop.permute.xlu1 %529 }
 0x6ca   :  { %v443_v27 = vpop.xlane.xlu0 %442 }
 0x6cb   :  { %1239 = vrcp.f32 %v443_v27  ;;  %v1193_v27 = vld [vmem:[%s1755_s9] ss:$16 sps:$4 sm:$0xff]  }
 0x6cd   :  { %v528_v33 = vpop.permute.xlu1 %527 }
 0x6ce   :  { %v474_v29 = vpop.xlane.xlu0 %473 }
 0x6cf   :  { %1241 = vrcp.f32 %v474_v29  ;;  %v1196_v29 = vld [vmem:[%s1755_s9 + $0x8] ss:$16 sps:$4 sm:$0xff]  }
 0x6d3   :  { %v1238_v46 = vpop.eup %1237 }
 0x6d4   :  { %v419_v58 = vmul.f32 %v1238_v46, %v1603_v57 }
 0x6d6   :  { %v505_v32 = vpop.xlane.xlu0 %504 }
 0x6d8   :  { %v1240_v47 = vpop.eup %1239 }
 0x6da   :  { %v446_v36 = vpop.xlane.xlu0 %445 }
 0x6db   :  { %1243 = vrcp.f32 %v446_v36 }
 0x6dc   :  { %1245 = vrcp.f32 %v505_v32  ;;  %v1242_v48 = vpop.eup %1241  ;;  %v1301_v32 = vmov 0  }
 0x6dd   :  { %v480_v55 = vmul.f32 %v1242_v48, %v1562_v31  ;;  %v1199_v48 = vld [vmem:[%s1757_s11 + $0x78] sm:$0xff]  }
 0x6de   :  { %v532_v38 = vpop.permute.xlu0 %531 }
 0x6df   :  { %1152 = vmatpush3.bf16.msra.mxu1 %v532_v38 }
 0x6e0   :  { %1153 = vmatprep.subr.bf16.mxu1 %v1293_v15 }
 0x6e3   :  { %1154 = vmatpush3.bf16.msra.mxu1 %v530_v30 }
 0x6e4   :  { %1155 = vmatprep.subr.bf16.mxu1 %v1293_v15 }
 0x6e7   :  { %1156 = vmatpush3.bf16.msra.mxu1 %v528_v33 }
 0x6e8   :  { %1157 = vmatprep.subr.bf16.mxu1 %v1293_v15  ;;  %v1244_v50 = vpop.eup %1243  ;;  %v449_v15 = vmul.f32 %v1240_v47, %v1558_v28 }
 0x6e9   :  { %v1246_v52 = vpop.eup %1245  ;;  %v450_v54 = vmul.f32 %v1244_v50, %v1580_v37  ;;  %v1200_v50 = vld [vmem:[%s1757_s11 + $0x38] sm:$0xff]  }
 0x6ea   :  { %v511_v59 = vmul.f32 %v1246_v52, %v1573_v35  ;;  %v513_v61 = vsel %vm397_vm6, %v418_v44, %v449_v15  ;;  %v1186_v35 = vld [vmem:[%s1749_s3] sm:$0xff]   ;;  %v1201_v52 = vld [vmem:[%s1757_s11 + $0x70] sm:$0xff]   ;;  %v1203_v15 = vld [vmem:[%s1757_s11 + $0x68] sm:$0xff]  }
 0x6eb   :  { %v514_v28 = vsel %vm397_vm6, %v419_v58, %v450_v54  ;;  %v515_v37 = vsel %vm45_vm0, %v513_v61, %v480_v55  ;;  %1166 = vmatpush3.bf16.msra.mxu0 %v1186_v35  ;;  %v1204_v54 = vld [vmem:[%s1757_s11 + $0x28] sm:$0xff]   ;;  %v1205_v55 = vld [vmem:[%s1757_s11 + $0x60] sm:$0xff]   ;;  %v1207_v44 = vld [vmem:[%s1757_s11 + $0x58] sm:$0xff]  }
 0x6ec   :  { %v518_v62 = vsel %vm517_vm7, %v515_v37, %v511_v59  ;;  %757 = vmatprep.subr.bf16.mxu0 %v1189_v22  ;;  %v1208_v58 = vld [vmem:[%s1757_s11 + $0x18] sm:$0xff]   ;;  %v1209_v59 = vld [vmem:[%s1757_s11 + $0x50] sm:$0xff]   ;;  %v1212_v61 = vld [vmem:[%s1757_s11 + $0x8] sm:$0xff]  }
 0x6ed   :  { %v1214_v37 = vld [vmem:[%s1757_s11] sm:$0xff]  }
 0x701   :  { %v477_v40 = vpop.xlane.xlu1 %476 }
 0x702   :  { %1247 = vrcp.f32 %v477_v40 }
 0x705   :  { %v508_v41 = vpop.xlane.xlu1 %507 }
 0x706   :  { %1249 = vrcp.f32 %v508_v41 }
 0x709   :  { %v526_v45 = vpop.permute.xlu1 %525 }
 0x70a   :  { %1158 = vmatpush3.bf16.msra.mxu1 %v526_v45 }
 0x70b   :  { %800 = vmatprep.subr.bf16.mxu1 %v1192_v24 }
 0x70f   :  { %v1248_v53 = vpop.eup %1247 }
 0x710   :  { %v481_v56 = vmul.f32 %v1248_v53, %v1588_v39  ;;  %v1202_v53 = vld [vmem:[%s1757_s11 + $0x30] sm:$0xff]  }
 0x712   :  { %v516_v31 = vsel %vm45_vm0, %v514_v28, %v481_v56  ;;  %v1206_v56 = vld [vmem:[%s1757_s11 + $0x20] sm:$0xff]  }
 0x713   :  { %v1250_v43 = vpop.eup %1249  ;;  %v1213_v28 = vld [vmem:[%s1757_s11 + $0x40] sm:$0xff]  }
 0x714   :  { %v512_v60 = vmul.f32 %v1250_v43, %v1599_v51  ;;  %v1210_v43 = vld [vmem:[%s1757_s11 + $0x10] sm:$0xff]  }
 0x716   :  { %v519_v39 = vsel %vm517_vm7, %v516_v31, %v512_v60  ;;  %v1211_v60 = vld [vmem:[%s1757_s11 + $0x48] sm:$0xff]   ;;  %v682_v31 = vlaneseq }
 0x717   :  { %v520_v49 = vpack.c.bf16 %v519_v39, %v518_v62 }
 0x718   :  { %v683_v62 = vshrl.u32 %v682_v31, 7 }
 0x719   :  { %1160 = vmatmul.mubr.msk.bf16.vlgmr.msra.gmra.mxu1 %vm537_vm8, %v520_v49  ;;  %v680_v49 = vld [vmem:[%s1756_s10] sm:$0xf]  ;;  %s1302_s10 = smov [#allocation2]  }
 0x71a   :  { %801 = vmatpush1.bf16.msra.mxu1 %v1190_v23  ;;  %820 = vmatprep.mubr.bf16.mxu1 %v1301_v32  ;;  %v684_v39 = vsub.s32 0, %v683_v62  ;;  %v688_v35 = vsub.s32 1, %v683_v62  ;;  %v696_v24 = vsub.s32 3, %v683_v62  ;;  %s1043_s11 = sshll.u32 %s1302_s10, 4  ;;  %s1044_s11 = int_to_ptr.vmem [resolvable:$true] %s1043_s11 }
 0x71b   :  { %802 = vmatprep.subr.bf16.mxu1 %v1198_v26  ;;  %s1271_s13 = scalar_lea.vmem %s1044_s11, 256  ;;  %p1276_p1 = scmp.lt.s32.totalorder %s1044_s11, %s1044_s11 }
 0x71c   :  { %p1272_p0 = scmp.ne.s32.totalorder %s1044_s11, %s1271_s13  ;;  %p1277_p2 = scmp.lt.s32.totalorder %s1271_s13, %s1271_s13 }
 0x71e   :  { %803 = vmatpush1.bf16.msra.mxu1 %v1196_v29  ;;  %p1278_p3 = por %p1277_p2, %p1276_p1 }
 0x720   :  { %p1279_p4 = pnand %p1278_p3, %p1272_p0 }
 0x7d9   :  { %v575_v57 = vpop.f32.mrf.mxu1 }
 0x7db   :  { %v1161_v51 = vpop.f32.mrf.mxu1 }
 0x7dc   :  { %v689_v51 = vrot.slane %v680_v49, %v688_v35 }
 0x7dd   :  { %v578_v63 = vpop.f32.mrf.mxu1 }
 0x7de   :  { %v582_v2 = vpack.c.bf16 %v578_v63, %v575_v57  ;;  %v685_v57 = vrot.slane %v680_v49, %v684_v39 }
 0x7df   :  { %v1162_v3 = vpop.f32.mrf.mxu1 }
 0x7e0   :  { %1168 = vmatmul.mubr.msk.bf16.vlgmr.msra.gmra.mxu0 %vm45_vm0, %v582_v2 }
 0x7e1   :  { %758 = vmatpush1.bf16.msra.mxu0 %v1187_v21  ;;  %777 = vmatprep.mubr.bf16.mxu0 %v1301_v32  ;;  %v697_v32 = vrot.slane %v680_v49, %v696_v24 }
 0x7e2   :  { %759 = vmatprep.subr.bf16.mxu0 %v1195_v25  ;;  %v692_v25 = vsub.s32 2, %v683_v62 }
 0x7e5   :  { %760 = vmatpush1.bf16.msra.mxu0 %v1193_v27 }
 0x7e6   :  { %1109 = vmatprep.subr.bf16.mxu0 %v1199_v48 }
 0x8a0   :  { %v636_v4 = vpop.f32.mrf.mxu0 }
 0x8a1   :  { %v1649_v5 = vadd.f32 %v636_v4, %v1373_v0 }
 0x8a2   :  { %v1169_v6 = vpop.f32.mrf.mxu0 }
 0x8a3   :  { %v645_v7 = vsel %vm45_vm0, %v1649_v5, 0.0 }
 0x8a4   :  { %646 = vadd.xlane.f32.xlu0 %v645_v7  ;;  %v639_v8 = vpop.f32.mrf.mxu0 }
 0x8a5   :  { %v1654_v9 = vadd.f32 %v639_v8, %v1378_v1 }
 0x8a6   :  { %v1170_v10 = vpop.f32.mrf.mxu0 }
 0x8a7   :  { %v648_v11 = vsel %vm45_vm0, %v1654_v9, 0.0 }
 0x8a8   :  { %649 = vadd.xlane.f32.xlu1 %v648_v11 }
 0x92d   :  { %v647_v12 = vpop.xlane.xlu0 %646 }
 0x92e   :  { %v651_v13 = vmul.f32 0.03125, %v647_v12 }
 0x930   :  { %v653_v14 = vsub.f32 %v1649_v5, %v651_v13 }
 0x931   :  { %v650_v0 = vpop.xlane.xlu1 %649 }
 0x932   :  { %v652_v16 = vmul.f32 0.03125, %v650_v0  ;;  %v655_v17 = vmul.f32 %v653_v14, %v653_v14 }
 0x934   :  { %v654_v18 = vsub.f32 %v1654_v9, %v652_v16  ;;  %v657_v19 = vsel %vm45_vm0, %v655_v17, 0.0 }
 0x935   :  { %658 = vadd.xlane.f32.xlu0 %v657_v19 }
 0x936   :  { %v656_v20 = vmul.f32 %v654_v18, %v654_v18 }
 0x938   :  { %v660_v1 = vsel %vm45_vm0, %v656_v20, 0.0 }
 0x939   :  { %661 = vadd.xlane.f32.xlu0 %v660_v1 }
 0x9be   :  { %v659_v34 = vpop.xlane.xlu0 %658 }
 0x9bf   :  { %v663_v36 = vmul.f32 0.03125, %v659_v34 }
 0x9c1   :  { %v665_v38 = vadd.f32 1e-05, %v663_v36  ;;  %v693_v36 = vrot.slane %v680_v49, %v692_v25 }
 0x9c2   :  { %v662_v30 = vpop.xlane.xlu0 %661 }
 0x9c3   :  { %v664_v33 = vmul.f32 0.03125, %v662_v30  ;;  %1251 = vrsqrt.f32 %v665_v38 }
 0x9c5   :  { %v666_v40 = vadd.f32 1e-05, %v664_v33 }
 0x9c7   :  { %1253 = vrsqrt.f32 %v666_v40 }
 0x9d0   :  { %v1252_v41 = vpop.eup %1251 }
 0x9d1   :  { %v669_v45 = vmul.f32 %v1252_v41, %v653_v14 }
 0x9d4   :  { %v1254_v42 = vpop.eup %1253 }
 0x9d5   :  { %v670_v46 = vmul.f32 %v1254_v42, %v654_v18 }
 0x9d7   :  { %v671_v47 = vpack.c.bf16 %v670_v46, %v669_v45 }
 0x9d9   :  { %1071 = vmatmul.mubr.msk.bf16.vlgmr.msra.gmra.mxu0 %vm45_vm0, %v671_v47  ;;  %1072 = vmatmul.mubr.msk.bf16.vlgmr.msra.gmra.mxu1 %vm45_vm0, %v671_v47 }
 0x9da   :  { %1110 = vmatpush3.bf16.msra.mxu0 %v1200_v50 }
 0x9db   :  { %1111 = vmatprep.subr.bf16.mxu0 %v1201_v52 }
 0x9de   :  { %1112 = vmatpush3.bf16.msra.mxu0 %v1202_v53 }
 0x9df   :  { %1113 = vmatprep.subr.bf16.mxu0 %v1203_v15 }
 0x9e2   :  { %1114 = vmatpush3.bf16.msra.mxu0 %v1204_v54 }
 0x9e3   :  { %1115 = vmatprep.subr.bf16.mxu0 %v1205_v55 }
 0x9e6   :  { %1116 = vmatpush3.bf16.msra.mxu0 %v1206_v56 }
 0x9e7   :  { %1117 = vmatprep.subr.bf16.mxu0 %v1207_v44 }
 0x9ea   :  { %1118 = vmatpush3.bf16.msra.mxu0 %v1208_v58 }
 0x9eb   :  { %1119 = vmatprep.subr.bf16.mxu0 %v1209_v59 }
 0x9ee   :  { %1120 = vmatpush3.bf16.msra.mxu0 %v1210_v43 }
 0x9ef   :  { %1121 = vmatprep.subr.bf16.mxu0 %v1211_v60 }
 0x9f2   :  { %1122 = vmatpush3.bf16.msra.mxu0 %v1212_v61 }
 0x9f3   :  { %1123 = vmatprep.subr.bf16.mxu0 %v1213_v28 }
 0x9f6   :  { %1124 = vmatpush3.bf16.msra.mxu0 %v1214_v37 }
 0xa99   :  { %v779_v63 = vpop.f32.mrf.mxu0  ;;  %v822_v22 = vpop.f32.mrf.mxu1 }
 0xa9a   :  { %v780_v2 = vadd.f32 %v779_v63, %v685_v57  ;;  %v823_v48 = vadd.f32 %v822_v22, %v693_v36 }
 0xa9b   :  { %v781_v3 = vpop.f32.mrf.mxu0  ;;  %v824_v23 = vpop.f32.mrf.mxu1 }
 0xa9c   :  { %v1073_v4 = vmul.f32 -1.442695, %v780_v2  ;;  %v782_v6 = vadd.f32 %v781_v3, %v689_v51  ;;  %v825_v45 = vadd.f32 %v824_v23, %v697_v32 }
 0xa9d   :  { %v783_v7 = vpop.f32.mrf.mxu0  ;;  %v826_v26 = vpop.f32.mrf.mxu1 }
 0xa9e   :  { %1255 = vpow2.f32 %v1073_v4  ;;  %v1074_v8 = vmul.f32 -1.442695, %v782_v6  ;;  %v784_v10 = vadd.f32 %v783_v7, %v685_v57  ;;  %v827_v42 = vadd.f32 %v826_v26, %v693_v36 }
 0xa9f   :  { %v785_v11 = vpop.f32.mrf.mxu0  ;;  %v828_v38 = vpop.f32.mrf.mxu1 }
 0xaa0   :  { %1257 = vpow2.f32 %v1074_v8  ;;  %v1075_v12 = vmul.f32 -1.442695, %v784_v10  ;;  %v786_v13 = vadd.f32 %v785_v11, %v689_v51  ;;  %v829_v47 = vadd.f32 %v828_v38, %v697_v32 }
 0xaa2   :  { %1259 = vpow2.f32 %v1075_v12  ;;  %v1076_v14 = vmul.f32 -1.442695, %v786_v13 }
 0xaa4   :  { %1261 = vpow2.f32 %v1076_v14 }
 0xaab   :  { %v1256_v0 = vpop.eup %1255 }
 0xaac   :  { %v843_v17 = vadd.f32 1.0, %v1256_v0 }
 0xaad   :  { %v1258_v16 = vpop.eup %1257 }
 0xaae   :  { %v844_v18 = vadd.f32 1.0, %v1258_v16 }
 0xaaf   :  { %v1260_v19 = vpop.eup %1259 }
 0xab0   :  { %1263 = vrcp.f32 %v844_v18  ;;  %v845_v20 = vadd.f32 1.0, %v1260_v19 }
 0xab1   :  { %v1262_v1 = vpop.eup %1261  ;;  %1265 = vrcp.f32 %v843_v17 }
 0xab2   :  { %1267 = vrcp.f32 %v845_v20  ;;  %v846_v21 = vadd.f32 1.0, %v1262_v1 }
 0xab4   :  { %1269 = vrcp.f32 %v846_v21 }
 0xabd   :  { %v1264_v27 = vpop.eup %1263 }
 0xabe   :  { %v1266_v29 = vpop.eup %1265  ;;  %v856_v30 = vmul.f32 %v1264_v27, %v782_v6 }
 0xabf   :  { %v1268_v34 = vpop.eup %1267  ;;  %v855_v41 = vmul.f32 %v1266_v29, %v780_v2 }
 0xac0   :  { %v857_v33 = vmul.f32 %v1268_v34, %v784_v10  ;;  %v860_v52 = vmul.f32 %v856_v30, %v825_v45 }
 0xac1   :  { %v1270_v40 = vpop.eup %1269  ;;  %v859_v15 = vmul.f32 %v855_v41, %v823_v48 }
 0xac2   :  { %v858_v46 = vmul.f32 %v1270_v40, %v786_v13  ;;  %v861_v50 = vmul.f32 %v857_v33, %v827_v42 }
 0xac4   :  { %v862_v53 = vmul.f32 %v858_v46, %v829_v47  ;;  %v863_v55 = vpack.c.bf16 %v861_v50, %v859_v15 }
 0xac6   :  { %v864_v54 = vpack.c.bf16 %v862_v53, %v860_v52 }
 0xac8   :  { %1025 = vmatprep.mubr.bf16.mxu0 %v864_v54 }
 0xac9   :  { %1026 = vmatmul.mubr.bf16.vlgmr.msra.gmra.mxu0 %v863_v55 }
 0xb89   :  { %v1125_v56 = vpop.f32.mrf.mxu0 }
 0xb8b   :  { %v1126_v44 = vpop.f32.mrf.mxu0 }
 0xb8c   :  { %v1127_v58 = vadd.f32 %v1126_v44, %v1125_v56 }
 0xb8d   :  { %v1128_v59 = vpop.f32.mrf.mxu0 }
 0xb8e   :  { %v1034_v43 = vadd.f32 %v1127_v58, %v1649_v5 }
 0xb8f   :  { %v1129_v60 = vpop.f32.mrf.mxu0 }
 0xb90   :  { %1036 = vst.msk [vmem:[#allocation2] sm:$0xff] %vm45_vm0, %v1034_v43  ;;  %v1130_v61 = vadd.f32 %v1129_v60, %v1128_v59 }
 0xb92   :  { %v1035_v28 = vadd.f32 %v1130_v61, %v1654_v9 }
 0xb94   :  { %1037 = vst.msk [vmem:[#allocation2 + $0x8] sm:$0xff] %vm45_vm0, %v1035_v28 }
 0xb95   :  { %1282 = shalt.err (!%p1279_p4)
}
 0xb96   :  { %s1303_s14 = smov 128   ;;  %s1304_s7 = smov 8  }
 0xb97   :  { %1049 = dma.vmem_to_hbm [thread:$0]  %s1044_s11, 256, %s1758_s12, [#allocation3], %s1303_s14, %s1303_s14, %s1304_s7  }
 0xb98   :  { %1291 = dma.done.wait [#allocation3], 256  }
 0xb99   :  { %1292 = vsyncadd [#allocation3], 4294967040 }
 0xb9a   :  { %1053 = vsyncpa [#allocation3], 1 }

</bundles_post_ra>
